<compile_context>
chip_gen: v5e
topology: v5e:2x2
jax: 0.10.0
libtpu: 0.0.40
codegen_flags: <defaults>
</compile_context>

<pallas_src>
import math
import functools

import jax
import jax.numpy as jnp
from jax.experimental import pallas as pl
from jax.experimental.pallas import tpu as pltpu


def _self_attention_kernel(x_ref, wq_ref, wk_ref, wv_ref,
                           bq_ref, bk_ref, bv_ref,
                           wo_ref, bo_ref,
                           o_ref, acc_ref, *, n_heads):
    # One grid step == (one batch element, one head).
    h = pl.program_id(1)

    x = x_ref[0]                                               # (L, D) bf16

    # ---- per-head projections (1/sqrt(hd) already folded into wq/bq) -------
    q = jnp.dot(x, wq_ref[0], preferred_element_type=jnp.float32) + bq_ref[0]
    k = jnp.dot(x, wk_ref[0], preferred_element_type=jnp.float32) + bk_ref[0]
    v = jnp.dot(x, wv_ref[0], preferred_element_type=jnp.float32) + bv_ref[0]

    q_b = q.astype(jnp.bfloat16)                               # (L, hd)
    k_b = k.astype(jnp.bfloat16)                               # (L, hd)
    v_b = v.astype(jnp.bfloat16)                               # (L, hd)

    # ---- scores[i, j] = q[i] . k[j]  (contract head_dim; MXU, f32 acc) -----
    scores = jax.lax.dot_general(
        q_b, k_b,
        dimension_numbers=(((1,), (1,)), ((), ())),
        preferred_element_type=jnp.float32)                    # (L, L)

    # ---- softmax (max-subtracted, f32; EUP approx reciprocal) --------------
    m = jnp.max(scores, axis=-1, keepdims=True)
    p = jnp.exp(scores - m)
    denom = jnp.sum(p, axis=-1, keepdims=True)
    p = p * pl.reciprocal(denom, approx=True)

    # ---- attention output for this head ------------------------------------
    o_h = jnp.dot(p.astype(jnp.bfloat16), v_b,
                  preferred_element_type=jnp.float32)          # (L, hd)

    # ---- this head's contribution to the output projection -----------------
    partial = jnp.dot(o_h.astype(jnp.bfloat16), wo_ref[0],
                      preferred_element_type=jnp.float32)      # (L, D)

    @pl.when(h == 0)
    def _():
        # Seed the accumulator with the output bias (saves a separate add at
        # the end) and avoid any explicit zero-init pass.
        acc_ref[...] = jnp.broadcast_to(bo_ref[...], acc_ref.shape)

    acc_ref[...] += partial

    @pl.when(h == n_heads - 1)
    def _():
        o_ref[0] = acc_ref[...].astype(o_ref.dtype)


def self_attention(x, wqkv, bqkv, wout, bout, *, n_heads):
    """x: (B, L, D) float32; weights in PyTorch layout (out_features, in_features)."""
    batch, length, dim = x.shape
    head_dim = dim // n_heads
    assert head_dim * n_heads == dim
    scale = 1.0 / math.sqrt(head_dim)

    # Pre-transpose qkv weight to (in, out) and split head-major: (H, D, hd).
    w_t = wqkv.T.astype(jnp.float32)                           # (D, 3D)

    def to_head_major(w_cols):                                 # (D, D) -> (H, D, hd)
        return jnp.transpose(w_cols.reshape(dim, n_heads, head_dim), (1, 0, 2))

    wq = to_head_major(w_t[:, 0 * dim:1 * dim] * scale).astype(jnp.bfloat16)
    wk = to_head_major(w_t[:, 1 * dim:2 * dim]).astype(jnp.bfloat16)
    wv = to_head_major(w_t[:, 2 * dim:3 * dim]).astype(jnp.bfloat16)

    bq = (bqkv[0 * dim:1 * dim] * scale).reshape(n_heads, 1, head_dim).astype(jnp.float32)
    bk = bqkv[1 * dim:2 * dim].reshape(n_heads, 1, head_dim).astype(jnp.float32)
    bv = bqkv[2 * dim:3 * dim].reshape(n_heads, 1, head_dim).astype(jnp.float32)

    # Out projection: attn @ wout.T; rows h*hd:(h+1)*hd of wout.T belong to head h.
    wo = wout.T.reshape(n_heads, head_dim, dim).astype(jnp.bfloat16)   # (H, hd, D)
    bo = bout.reshape(1, dim).astype(jnp.float32)

    x_b = x.astype(jnp.bfloat16)

    kernel = functools.partial(_self_attention_kernel, n_heads=n_heads)

    return pl.pallas_call(
        kernel,
        out_shape=jax.ShapeDtypeStruct((batch, length, dim), x.dtype),
        grid_spec=pltpu.PrefetchScalarGridSpec(
            num_scalar_prefetch=0,
            grid=(batch, n_heads),
            in_specs=[
                pl.BlockSpec((1, length, dim),   lambda b, h: (b, 0, 0)),  # x (reused across heads)
                pl.BlockSpec((1, dim, head_dim), lambda b, h: (h, 0, 0)),  # W_q
                pl.BlockSpec((1, dim, head_dim), lambda b, h: (h, 0, 0)),  # W_k
                pl.BlockSpec((1, dim, head_dim), lambda b, h: (h, 0, 0)),  # W_v
                pl.BlockSpec((1, 1, head_dim),   lambda b, h: (h, 0, 0)),  # b_q
                pl.BlockSpec((1, 1, head_dim),   lambda b, h: (h, 0, 0)),  # b_k
                pl.BlockSpec((1, 1, head_dim),   lambda b, h: (h, 0, 0)),  # b_v
                pl.BlockSpec((1, head_dim, dim), lambda b, h: (h, 0, 0)),  # W_out (head rows)
                pl.BlockSpec((1, dim),           lambda b, h: (0, 0)),     # b_out
            ],
            out_specs=pl.BlockSpec((1, length, dim), lambda b, h: (b, 0, 0)),
            scratch_shapes=[pltpu.VMEM((length, dim), jnp.float32)],
        ),
        compiler_params=pltpu.CompilerParams(
            dimension_semantics=("parallel", "arbitrary")),
    )(x_b, wq, wk, wv, bq, bk, bv, wo, bo)


def self_attention_ref(x, wqkv, bqkv, wout, bout, *, n_heads):
    """Pure-JAX f32 reference mirroring the PyTorch module."""
    batch, length, dim = x.shape
    head_dim = dim // n_heads
    qkv = x @ wqkv.T + bqkv                                    # (B, L, 3D)
    qkv = qkv.reshape(batch, length, 3, n_heads, head_dim)
    qkv = jnp.transpose(qkv, (2, 0, 3, 1, 4))                  # (3, B, H, L, hd)
    q, k, v = qkv[0], qkv[1], qkv[2]
    scale = 1.0 / math.sqrt(head_dim)
    scores = jnp.einsum('bhqd,bhkd->bhqk', q, k) * scale
    p = jax.nn.softmax(scores, axis=-1)
    out = jnp.einsum('bhqk,bhkd->bhqd', p, v)                  # (B, H, L, hd)
    out = jnp.transpose(out, (0, 2, 1, 3)).reshape(batch, length, dim)
    return out @ wout.T + bout


if __name__ == "__main__":
    batch, length, dim, n_heads = 2, 8, 32, 4

    key = jax.random.PRNGKey(0)
    kx, kw1, kb1, kw2, kb2 = jax.random.split(key, 5)

    x = jax.random.normal(kx, (batch, length, dim), dtype=jnp.float32)

    # Deterministic synthetic parameters (shapes per nn.Linear in __init__).
    bound = 1.0 / math.sqrt(dim)
    wqkv = jax.random.uniform(kw1, (3 * dim, dim), jnp.float32, -bound, bound)
    bqkv = jax.random.uniform(kb1, (3 * dim,), jnp.float32, -bound, bound)
    wout = jax.random.uniform(kw2, (dim, dim), jnp.float32, -bound, bound)
    bout = jax.random.uniform(kb2, (dim,), jnp.float32, -bound, bound)

    out = self_attention(x, wqkv, bqkv, wout, bout, n_heads=n_heads)
    out = jax.block_until_ready(out)

    ref = self_attention_ref(x, wqkv, bqkv, wout, bout, n_heads=n_heads)
    assert out.shape == (batch, length, dim)
    # bf16 MXU inputs + approx reciprocal -> compare vs f32 reference with a
    # correspondingly looser tolerance (still catches structural/ordering bugs).
    assert jnp.allclose(out, ref, atol=3e-2, rtol=3e-2), "mismatch vs reference"

    print("KERNEL_OK")
</pallas_src>

<mosaic_0001>
module attributes {stable_mosaic.version = 11 : i64} {
  func.func @_self_attention_kernel(%arg0: i32, %arg1: i32, %arg2: memref<1x8x32xbf16, #tpu.memory_space<vmem>>, %arg3: memref<1x32x8xbf16, #tpu.memory_space<vmem>>, %arg4: memref<1x32x8xbf16, #tpu.memory_space<vmem>>, %arg5: memref<1x32x8xbf16, #tpu.memory_space<vmem>>, %arg6: memref<1x1x8xf32, #tpu.memory_space<vmem>>, %arg7: memref<1x1x8xf32, #tpu.memory_space<vmem>>, %arg8: memref<1x1x8xf32, #tpu.memory_space<vmem>>, %arg9: memref<1x8x32xbf16, #tpu.memory_space<vmem>>, %arg10: memref<1x32xf32, #tpu.memory_space<vmem>>, %arg11: memref<1x8x32xf32, #tpu.memory_space<vmem>>, %arg12: memref<8x32xf32, #tpu.memory_space<vmem>>) attributes {dimension_semantics = [#tpu.dimension_semantics<parallel>, #tpu.dimension_semantics<arbitrary>], iteration_bounds = array<i64: 2, 4>, scalar_prefetch = 0 : i64, scratch_operands = 1 : i64, tpu.core_type = #tpu.core_type<tc>, window_params = [{transform_indices = @transform_0, window_bounds = array<i64: 1, 8, 32>}, {transform_indices = @transform_1, window_bounds = array<i64: 1, 32, 8>}, {transform_indices = @transform_2, window_bounds = array<i64: 1, 32, 8>}, {transform_indices = @transform_3, window_bounds = array<i64: 1, 32, 8>}, {transform_indices = @transform_4, window_bounds = array<i64: 1, 1, 8>}, {transform_indices = @transform_5, window_bounds = array<i64: 1, 1, 8>}, {transform_indices = @transform_6, window_bounds = array<i64: 1, 1, 8>}, {transform_indices = @transform_7, window_bounds = array<i64: 1, 8, 32>}, {pipeline_mode = #tpu.pipeline_mode<synchronous>, transform_indices = @transform_8, window_bounds = array<i64: 1, 32>}, {transform_indices = @transform_9, window_bounds = array<i64: 1, 8, 32>}]} {
    %c0 = arith.constant 0 : index
    %c0_0 = arith.constant 0 : index
    %c0_1 = arith.constant 0 : index
    %0 = vector.load %arg2[%c0, %c0_0, %c0_1] : memref<1x8x32xbf16, #tpu.memory_space<vmem>>, vector<1x8x32xbf16>
    %1 = vector.shape_cast %0 : vector<1x8x32xbf16> to vector<8x32xbf16>
    %c0_2 = arith.constant 0 : index
    %c0_3 = arith.constant 0 : index
    %c0_4 = arith.constant 0 : index
    %2 = vector.load %arg3[%c0_2, %c0_3, %c0_4] : memref<1x32x8xbf16, #tpu.memory_space<vmem>>, vector<1x32x8xbf16>
    %3 = vector.shape_cast %2 : vector<1x32x8xbf16> to vector<32x8xbf16>
    %cst = arith.constant dense<0.000000e+00> : vector<8x8xf32>
    %4 = tpu.matmul %1, %3, %cst {dimension_numbers = #tpu.dot_dimension_numbers<[1], [0], [0], [1], [0, 0, 1, 1], [], []>} : vector<8x32xbf16>, vector<32x8xbf16>, vector<8x8xf32> -> vector<8x8xf32>
    %c0_5 = arith.constant 0 : index
    %c0_6 = arith.constant 0 : index
    %c0_7 = arith.constant 0 : index
    %5 = vector.load %arg6[%c0_5, %c0_6, %c0_7] : memref<1x1x8xf32, #tpu.memory_space<vmem>>, vector<1x1x8xf32>
    %6 = vector.shape_cast %5 : vector<1x1x8xf32> to vector<1x8xf32>
    %7 = vector.broadcast %6 : vector<1x8xf32> to vector<8x8xf32>
    %8 = arith.addf %4, %7 : vector<8x8xf32>
    %c0_8 = arith.constant 0 : index
    %c0_9 = arith.constant 0 : index
    %c0_10 = arith.constant 0 : index
    %9 = vector.load %arg4[%c0_8, %c0_9, %c0_10] : memref<1x32x8xbf16, #tpu.memory_space<vmem>>, vector<1x32x8xbf16>
    %10 = vector.shape_cast %9 : vector<1x32x8xbf16> to vector<32x8xbf16>
    %cst_11 = arith.constant dense<0.000000e+00> : vector<8x8xf32>
    %11 = tpu.matmul %1, %10, %cst_11 {dimension_numbers = #tpu.dot_dimension_numbers<[1], [0], [0], [1], [0, 0, 1, 1], [], []>} : vector<8x32xbf16>, vector<32x8xbf16>, vector<8x8xf32> -> vector<8x8xf32>
    %c0_12 = arith.constant 0 : index
    %c0_13 = arith.constant 0 : index
    %c0_14 = arith.constant 0 : index
    %12 = vector.load %arg7[%c0_12, %c0_13, %c0_14] : memref<1x1x8xf32, #tpu.memory_space<vmem>>, vector<1x1x8xf32>
    %13 = vector.shape_cast %12 : vector<1x1x8xf32> to vector<1x8xf32>
    %14 = vector.broadcast %13 : vector<1x8xf32> to vector<8x8xf32>
    %15 = arith.addf %11, %14 : vector<8x8xf32>
    %c0_15 = arith.constant 0 : index
    %c0_16 = arith.constant 0 : index
    %c0_17 = arith.constant 0 : index
    %16 = vector.load %arg5[%c0_15, %c0_16, %c0_17] : memref<1x32x8xbf16, #tpu.memory_space<vmem>>, vector<1x32x8xbf16>
    %17 = vector.shape_cast %16 : vector<1x32x8xbf16> to vector<32x8xbf16>
    %cst_18 = arith.constant dense<0.000000e+00> : vector<8x8xf32>
    %18 = tpu.matmul %1, %17, %cst_18 {dimension_numbers = #tpu.dot_dimension_numbers<[1], [0], [0], [1], [0, 0, 1, 1], [], []>} : vector<8x32xbf16>, vector<32x8xbf16>, vector<8x8xf32> -> vector<8x8xf32>
    %c0_19 = arith.constant 0 : index
    %c0_20 = arith.constant 0 : index
    %c0_21 = arith.constant 0 : index
    %19 = vector.load %arg8[%c0_19, %c0_20, %c0_21] : memref<1x1x8xf32, #tpu.memory_space<vmem>>, vector<1x1x8xf32>
    %20 = vector.shape_cast %19 : vector<1x1x8xf32> to vector<1x8xf32>
    %21 = vector.broadcast %20 : vector<1x8xf32> to vector<8x8xf32>
    %22 = arith.addf %18, %21 : vector<8x8xf32>
    %23 = arith.truncf %8 : vector<8x8xf32> to vector<8x8xbf16>
    %24 = arith.truncf %15 : vector<8x8xf32> to vector<8x8xbf16>
    %25 = arith.truncf %22 : vector<8x8xf32> to vector<8x8xbf16>
    %cst_22 = arith.constant dense<0.000000e+00> : vector<8x8xf32>
    %26 = tpu.matmul %23, %24, %cst_22 {dimension_numbers = #tpu.dot_dimension_numbers<[1], [1], [0], [0], [0, 0, 1, 0], [], []>} : vector<8x8xbf16>, vector<8x8xbf16>, vector<8x8xf32> -> vector<8x8xf32>
    %cst_23 = arith.constant dense<0xFF800000> : vector<8xf32>
    %27 = vector.multi_reduction <maximumf>, %26, %cst_23 [1] : vector<8x8xf32> to vector<8xf32>
    %28 = vector.shape_cast %27 : vector<8xf32> to vector<8x1xf32>
    %29 = vector.broadcast %28 : vector<8x1xf32> to vector<8x8xf32>
    %30 = arith.subf %26, %29 : vector<8x8xf32>
    %31 = math.exp %30 : vector<8x8xf32>
    %cst_24 = arith.constant dense<0.000000e+00> : vector<8xf32>
    %32 = vector.multi_reduction <add>, %31, %cst_24 [1] : vector<8x8xf32> to vector<8xf32>
    %33 = vector.shape_cast %32 : vector<8xf32> to vector<8x1xf32>
    %34 = tpu.reciprocal %33 {approx = true} : vector<8x1xf32> -> vector<8x1xf32>
    %35 = vector.broadcast %34 : vector<8x1xf32> to vector<8x8xf32>
    %36 = arith.mulf %31, %35 : vector<8x8xf32>
    %37 = arith.truncf %36 : vector<8x8xf32> to vector<8x8xbf16>
    %cst_25 = arith.constant dense<0.000000e+00> : vector<8x8xf32>
    %38 = tpu.matmul %37, %25, %cst_25 {dimension_numbers = #tpu.dot_dimension_numbers<[1], [0], [0], [1], [0, 0, 1, 1], [], []>} : vector<8x8xbf16>, vector<8x8xbf16>, vector<8x8xf32> -> vector<8x8xf32>
    %39 = arith.truncf %38 : vector<8x8xf32> to vector<8x8xbf16>
    %c0_26 = arith.constant 0 : index
    %c0_27 = arith.constant 0 : index
    %c0_28 = arith.constant 0 : index
    %40 = vector.load %arg9[%c0_26, %c0_27, %c0_28] : memref<1x8x32xbf16, #tpu.memory_space<vmem>>, vector<1x8x32xbf16>
    %41 = vector.shape_cast %40 : vector<1x8x32xbf16> to vector<8x32xbf16>
    %cst_29 = arith.constant dense<0.000000e+00> : vector<8x32xf32>
    %42 = tpu.matmul %39, %41, %cst_29 {dimension_numbers = #tpu.dot_dimension_numbers<[1], [0], [0], [1], [0, 0, 1, 1], [], []>} : vector<8x8xbf16>, vector<8x32xbf16>, vector<8x32xf32> -> vector<8x32xf32>
    %c0_i32 = arith.constant 0 : i32
    %43 = arith.cmpi eq, %arg1, %c0_i32 : i32
    %44 = arith.extui %43 : i1 to i32
    %c0_i32_30 = arith.constant 0 : i32
    %45 = arith.cmpi ne, %44, %c0_i32_30 : i32
    scf.if %45 {
      %c0_36 = arith.constant 0 : index
      %c0_37 = arith.constant 0 : index
      %52 = vector.load %arg10[%c0_36, %c0_37] : memref<1x32xf32, #tpu.memory_space<vmem>>, vector<1x32xf32>
      %53 = vector.shape_cast %52 : vector<1x32xf32> to vector<1x32xf32>
      %54 = vector.broadcast %53 : vector<1x32xf32> to vector<8x32xf32>
      %c0_38 = arith.constant 0 : index
      %c0_39 = arith.constant 0 : index
      %55 = vector.load %arg12[%c0_38, %c0_39] : memref<8x32xf32, #tpu.memory_space<vmem>>, vector<8x32xf32>
      tpu.vector_store %arg12[%c0_38, %c0_39], %54 {strides = array<i32>} : memref<8x32xf32, #tpu.memory_space<vmem>>, vector<8x32xf32>,
    } else {
    }
    %c0_31 = arith.constant 0 : index
    %c0_32 = arith.constant 0 : index
    %46 = vector.load %arg12[%c0_31, %c0_32] : memref<8x32xf32, #tpu.memory_space<vmem>>, vector<8x32xf32>
    %47 = arith.addf %46, %42 : vector<8x32xf32>
    %c0_33 = arith.constant 0 : index
    %c0_34 = arith.constant 0 : index
    %48 = vector.load %arg12[%c0_33, %c0_34] : memref<8x32xf32, #tpu.memory_space<vmem>>, vector<8x32xf32>
    tpu.vector_store %arg12[%c0_33, %c0_34], %47 {strides = array<i32>} : memref<8x32xf32, #tpu.memory_space<vmem>>, vector<8x32xf32>,
    %c3_i32 = arith.constant 3 : i32
    %49 = arith.cmpi eq, %arg1, %c3_i32 : i32
    %50 = arith.extui %49 : i1 to i32
    %c0_i32_35 = arith.constant 0 : i32
    %51 = arith.cmpi ne, %50, %c0_i32_35 : i32
    scf.if %51 {
      %c0_36 = arith.constant 0 : index
      %c0_37 = arith.constant 0 : index
      %52 = vector.load %arg12[%c0_36, %c0_37] : memref<8x32xf32, #tpu.memory_space<vmem>>, vector<8x32xf32>
      %c0_38 = arith.constant 0 : index
      %c0_39 = arith.constant 0 : index
      %c0_40 = arith.constant 0 : index
      %53 = vector.load %arg11[%c0_38, %c0_39, %c0_40] : memref<1x8x32xf32, #tpu.memory_space<vmem>>, vector<1x8x32xf32>
      %54 = vector.shape_cast %53 : vector<1x8x32xf32> to vector<8x32xf32>
      %55 = vector.shape_cast %52 : vector<8x32xf32> to vector<1x8x32xf32>
      tpu.vector_store %arg11[%c0_38, %c0_39, %c0_40], %55 {strides = array<i32>} : memref<1x8x32xf32, #tpu.memory_space<vmem>>, vector<1x8x32xf32>,
    } else {
    }
    return
  }
  func.func @transform_0(%arg0: i32, %arg1: i32) -> (i32, i32, i32) {
    %c0_i32 = arith.constant 0 : i32
    %c0_i32_0 = arith.constant 0 : i32
    %c0_i32_1 = arith.constant 0 : i32
    return %arg0, %c0_i32, %c0_i32_0 : i32, i32, i32
  }
  func.func @transform_1(%arg0: i32, %arg1: i32) -> (i32, i32, i32) {
    %c0_i32 = arith.constant 0 : i32
    %c0_i32_0 = arith.constant 0 : i32
    %c0_i32_1 = arith.constant 0 : i32
    return %arg1, %c0_i32, %c0_i32_0 : i32, i32, i32
  }
  func.func @transform_2(%arg0: i32, %arg1: i32) -> (i32, i32, i32) {
    %c0_i32 = arith.constant 0 : i32
    %c0_i32_0 = arith.constant 0 : i32
    %c0_i32_1 = arith.constant 0 : i32
    return %arg1, %c0_i32, %c0_i32_0 : i32, i32, i32
  }
  func.func @transform_3(%arg0: i32, %arg1: i32) -> (i32, i32, i32) {
    %c0_i32 = arith.constant 0 : i32
    %c0_i32_0 = arith.constant 0 : i32
    %c0_i32_1 = arith.constant 0 : i32
    return %arg1, %c0_i32, %c0_i32_0 : i32, i32, i32
  }
  func.func @transform_4(%arg0: i32, %arg1: i32) -> (i32, i32, i32) {
    %c0_i32 = arith.constant 0 : i32
    %c0_i32_0 = arith.constant 0 : i32
    %c0_i32_1 = arith.constant 0 : i32
    return %arg1, %c0_i32, %c0_i32_0 : i32, i32, i32
  }
  func.func @transform_5(%arg0: i32, %arg1: i32) -> (i32, i32, i32) {
    %c0_i32 = arith.constant 0 : i32
    %c0_i32_0 = arith.constant 0 : i32
    %c0_i32_1 = arith.constant 0 : i32
    return %arg1, %c0_i32, %c0_i32_0 : i32, i32, i32
  }
  func.func @transform_6(%arg0: i32, %arg1: i32) -> (i32, i32, i32) {
    %c0_i32 = arith.constant 0 : i32
    %c0_i32_0 = arith.constant 0 : i32
    %c0_i32_1 = arith.constant 0 : i32
    return %arg1, %c0_i32, %c0_i32_0 : i32, i32, i32
  }
  func.func @transform_7(%arg0: i32, %arg1: i32) -> (i32, i32, i32) {
    %c0_i32 = arith.constant 0 : i32
    %c0_i32_0 = arith.constant 0 : i32
    %c0_i32_1 = arith.constant 0 : i32
    return %arg1, %c0_i32, %c0_i32_0 : i32, i32, i32
  }
  func.func @transform_8(%arg0: i32, %arg1: i32) -> (i32, i32) {
    %c0_i32 = arith.constant 0 : i32
    %c0_i32_0 = arith.constant 0 : i32
    %c0_i32_1 = arith.constant 0 : i32
    return %c0_i32, %c0_i32_0 : i32, i32
  }
  func.func @transform_9(%arg0: i32, %arg1: i32) -> (i32, i32, i32) {
    %c0_i32 = arith.constant 0 : i32
    %c0_i32_0 = arith.constant 0 : i32
    %c0_i32_1 = arith.constant 0 : i32
    return %arg0, %c0_i32, %c0_i32_0 : i32, i32, i32
  }
}

</mosaic_0001>

<bundles_post_ra>
// kernel: tpu_custom_call.1
= control target key start
LH: loop header
LB: loop body
LE: loop exit
PB: predicated region body
PF: predicated region fallthrough
CT: control target
= control target key end

     0   :  { %s1279_s0 = inlined_call_operand.vmem [shape: bf16[2,8,32], index: 0, kind: input, shape index: {}]   ;;  %s1280_s1 = inlined_call_operand.vmem [shape: bf16[4,32,8], index: 1, kind: input, shape index: {}]   ;;  %s1281_s2 = inlined_call_operand.vmem [shape: bf16[4,32,8], index: 2, kind: input, shape index: {}]   ;;  %s1282_s3 = inlined_call_operand.vmem [shape: bf16[4,32,8], index: 3, kind: input, shape index: {}]   ;;  %s1283_s4 = inlined_call_operand.vmem [shape: f32[4,1,8], index: 4, kind: input, shape index: {}]   ;;  %s1284_s5 = inlined_call_operand.vmem [shape: f32[4,1,8], index: 5, kind: input, shape index: {}]   ;;  %s1285_s6 = inlined_call_operand.vmem [shape: f32[4,1,8], index: 6, kind: input, shape index: {}]   ;;  %s1286_s7 = inlined_call_operand.vmem [shape: bf16[4,8,32], index: 7, kind: input, shape index: {}]   ;;  %s1287_s8 = inlined_call_operand.vmem [shape: f32[1,32], index: 8, kind: input, shape index: {}]   ;;  %s1288_s9 = inlined_call_operand.hbm [shape: f32[2,8,32], index: 9, kind: output, shape index: {}]  }
   0x1   :  { %1296 = sst [smem:[#allocation14_spill]] %s1283_s4 }
   0x2   :  { %14 = vsyncpa [#allocation4], 0 }
   0x3   :  { %16 = vsyncpa [#allocation4 + $0x1], 0  ;;  %s1103_s30 = smov 0   ;;  %s1105_s10 = smov 0  }
   0x4   :  { %s1107_s11 = smov 0   ;;  %s1109_s12 = smov 0  }
   0x5   :  { %s1111_s13 = smov 0   ;;  %s1113_s14 = smov 0  }
   0x6   :  { %s1115_s15 = smov 0   ;;  %s1117_s16 = smov 0  }
   0x7 LB: > { %1297 = sst [smem:[#allocation6_spill]] %s1023_s30  ;;  %s819_s17 = sadd.s32 4294967295, %s1051_s16   ;;  %s1051_s16 = sphi %s1117_s16, %s22_s16   ;;  %s1047_s15 = sphi %s1115_s15, %s1316_s15   ;;  %s1043_s14 = sphi %s1113_s14, %s1315_s14   ;;  %s1039_s13 = sphi %s1111_s13, %s1314_s13   ;;  %s1035_s12 = sphi %s1109_s12, %s1313_s12   ;;  %s1031_s11 = sphi %s1107_s11, %s1312_s11   ;;  %s1027_s10 = sphi %s1105_s10, %s1318_s10   ;;  %s1023_s30 = sphi %s1103_s30, %s1317_s30  }
   0x8   : > { %1298 = sst [smem:[#allocation7_spill]] %s1031_s11  ;;  %s820_s18 = sadd.s32 4294967294, %s1051_s16  }
   0x9   : > { %1299 = sst [smem:[#allocation8_spill]] %s1043_s14  ;;  %s31_s19 = sadd.s32 1, %s1043_s14 }
   0xa   : > { %1300 = sst [smem:[#allocation9_spill]] %s1047_s15  ;;  %p32_p0 = scmp.ge.s32.totalorder %s31_s19, 4 }
   0xb   : > { %s34_s20 = sadd.s32 1, %s1047_s15  ;;  %p280_p1 = scmp.ne.s32.totalorder %s1031_s11, %s1027_s10 }
   0xc   : > { %p281_p2 = scmp.eq.s32.totalorder %s819_s17, 7  ;;  %s1320_s19 = smov (%p32_p0, %s31_s19), 0 }
   0xd   : > { %1301 = sst [smem:[#allocation10_spill]] %s1320_s19  ;;  %s1322_s20 = smov (!%p32_p0, %s34_s20), %s1047_s15 }
   0xe   : > { %p1152_p3 = por %p281_p2, %p280_p1  ;;  %p286_p4 = scmp.ne.s32.totalorder %s1027_s10, %s1023_s30 }
   0xf   : > { %p36_p5 = scmp.ge.s32.totalorder %s1322_s20, 2  ;;  %p287_p6 = scmp.eq.s32.totalorder %s820_s18, 7 }
  0x10   : > { %p823_p7 = scmp.ge.s32.totalorder %s1051_s16, 1  ;;  %p364_p8 = scmp.lt.s32.totalorder %s1051_s16, 9 }
  0x11   : > { %s1324_s20 = smov (%p36_p5, %s1322_s20), 0  ;;  %p1162_p9 = por %p287_p6, %p286_p4 }
  0x12   : > { %1303 = sst [smem:[#allocation11_spill]] %s1324_s20  ;;  %p365_p10 = pnand %p823_p7, %p364_p8 }
  0x13   : > { %s1304_s22 = scalar_select %p1162_p9, 1, 0 }
  0x14   : > { %s267_s23 = ssub.s32 %s1047_s15, %s1324_s20  ;;  %s270_s24 = sadd.s32 1, %s1031_s11 }
  0x15   : > { %1305 = sst [smem:[#allocation12_spill]] %s1304_s22  ;;  %p268_p11 = scmp.eq.s32.totalorder %s267_s23, 0 }
  0x16   : > { %368 = sbr.rel (%p365_p10) target bundleno = 863 (0x35f), region = 56  ;;  %s1290_s26 = sand.u32 (!%p365_p10), 1, %s1027_s10  }
  0x17   : > { %s1170_s25 = scalar_select %p268_p11, %s1031_s11, %s270_s24  }
  0x18   : > { %p431_p12 = scmp.lt.s32.totalorder (!%p365_p10), %s1035_s12, 3  ;;  %s1176_s27 = sshll.u32 (!%p365_p10), %s1290_s26, 3 }
  0x19   : > { %1306 = sst [smem:[#allocation13_spill]] %s1170_s25  ;;  %p427_p13 = scmp.lt.s32.totalorder (!%p365_p10), %s1039_s13, 1 }
  0x1a   : > { %s1307_s4 = sld [smem:[#allocation14_spill]] (!%p365_p10)  ;;  %p863_p0 = scmp.ne.s32.totalorder (!%p365_p10), %s1035_s12, 0 }
  0x1b   : > { %s1180_s28 = scalar_select %p431_p12, %s1035_s12, 3  ;;  %vm481_vm0 = vcmask 261120   ;;  %vm567_vm1 = vcmask 64512   ;;  %vm602_vm2 = vcmask 1043456  }
  0x1c   : > { %s428_s29 = scalar_select %p427_p13, %s1039_s13, 1 }
  0x1d   : > { %s1184_s17 = sshll.u32 %s1180_s28, 4  ;;  %s451_s19 = scalar_lea.vmem %s1284_s5, %s1180_s28 }
  0x1e   : > { %s435_s26 = scalar_lea.vmem %s1280_s1, %s1184_s17  ;;  %s440_s25 = scalar_lea.vmem %s1281_s2, %s1184_s17  ;;  %v950_v5 = vld [vmem:[%s451_s19] ss:$0 sm:$0xff] }
  0x1f   : > { %v873_v0 = vld [vmem:[%s435_s26 + $0x8] sm:$0xff]  ;;  %s825_s11 = sshll.u32 %s428_s29, 2  ;;  %v872_v2 = vld [vmem:[%s435_s26] sm:$0xff]  ;;  %s454_s20 = scalar_lea.vmem %s1285_s6, %s1180_s28 }
  0x20   : > { %s448_s24 = scalar_lea.vmem %s1307_s4, %s1180_s28  ;;  %v875_v1 = vld [vmem:[%s440_s25 + $0x8] sm:$0xff]  ;;  %491 = vmatpush.bf16.msra.mxu0 %v873_v0  ;;  %v874_v3 = vld [vmem:[%s440_s25] sm:$0xff]  ;;  %s430_s23 = scalar_lea.vmem %s1279_s0, %s825_s11 }
  0x21   : > { %524 = vmatpush.bf16.msra.mxu1 %v875_v1  ;;  %v460_v4 = vld [vmem:[%s430_s23] sm:$0xf]  ;;  %s445_s11 = scalar_lea.vmem %s1282_s3, %s1184_s17  ;;  %s832_s22 = sshll.u32 %s1180_s28, 2 }
  0x22   : > { %v949_v8 = vld [vmem:[%s448_s24] ss:$0 sm:$0xff]  ;;  %v877_v16 = vld [vmem:[%s445_s11 + $0x8] sm:$0xff]  ;;  %s458_s29 = scalar_lea.vmem %s1286_s7, %s832_s22  ;;  %s426_s28 = scalar_lea.vmem [#allocation3], %s1176_s27 }
  0x23   : > { %557 = vmatpush.bf16.msra.mxu2 %v877_v16  ;;  %v876_v17 = vld [vmem:[%s445_s11] sm:$0xff] }
  0x24   : > { %492 = vmatpush.bf16.msra.mxu0 %v872_v2  ;;  %v951_v21 = vld [vmem:[%s454_s20] ss:$0 sm:$0xff] }
  0x25   : > { %525 = vmatpush.bf16.msra.mxu1 %v874_v3  ;;  %v620_v32 = vld [vmem:[%s458_s29] sm:$0xf] }
  0x26   : > { %v625_v33 = vsel %vm602_vm2, %v620_v32, 0 }
  0x27   : > { %841 = vmatmul.msk.bf16.vlgmr.msra.gmra.mxu0 %vm481_vm0, %v460_v4  ;;  %558 = vmatpush.bf16.msra.mxu2 %v876_v17 }
  0x28   : > { %850 = vmatmul.msk.bf16.vlgmr.msra.gmra.mxu1 %vm481_vm0, %v460_v4 }
  0x29   : > { %634 = vmatpush.bf16.msrb.mxu1 %v625_v33 }
  0x2a   : > { %859 = vmatmul.msk.bf16.vlgmr.msra.gmra.mxu2 %vm481_vm0, %v460_v4 }
  0xa4   : > { %v494_v6 = vpop.f32.mrf.mxu0 }
  0xa5   : > { %v527_v7 = vpop.f32.mrf.mxu1  ;;  %v495_v11 = vadd.f32 %v949_v8, %v494_v6 }
  0xa6   : > { %v528_v9 = vadd.f32 %v950_v5, %v527_v7 }
  0xa7   : > { %v564_v15 = vpack.c.bf16 %v495_v11, %v495_v11 }
  0xa8   : > { %v565_v10 = vpack.c.bf16 %v528_v9, %v528_v9 }
  0xaa   : > { %v572_v12 = vsel %vm567_vm1, %v565_v10, 0 }
  0xab   : > { %581 = vmatpush.bf16.xpose.msra.mxu3 %v572_v12 }
  0xac   : > { %v496_v13 = vpop.f32.mrf.mxu0 }
  0xad   : > { %v529_v14 = vpop.f32.mrf.mxu1  ;;  %v560_v22 = vpop.f32.mrf.mxu2 }
  0xae   : > { %v561_v24 = vadd.f32 %v951_v21, %v560_v22 }
  0xb0   : > { %v566_v26 = vpack.c.bf16 %v561_v24, %v561_v24 }
  0xb2   : > { %860 = vmatmul.msk.bf16.vlgmr.msra.gmra.mxu3 %vm567_vm1, %v564_v15  ;;  %v604_v28 = vsel %vm602_vm2, %v566_v26, 0 }
  0xb3   : > { %613 = vmatpush.bf16.msrb.mxu0 %v604_v28 }
  0xb5   : > { %v562_v29 = vpop.f32.mrf.mxu2 }
 0x135   : > { %v583_v18 = vpop.f32.mrf.mxu3 }
 0x136   : > { %v587_v19 = vsel %vm567_vm1, %v583_v18, -inf }
 0x137   : > { %588 = vmax.xlane.f32.xlu0 %v587_v19 }
 0x13d   : > { %v585_v20 = vpop.f32.mrf.mxu3 }
 0x1aa   : > { %v589_v23 = vpop.xlane.xlu0 %588 }
 0x1ab   : > { %v590_v25 = vsub.f32 %v583_v18, %v589_v23 }
 0x1ad   : > { %v591_v27 = vmul.f32 1.442695, %v590_v25 }
 0x1af   : > { %952 = vpow2.f32 %v591_v27 }
 0x1b5   : > { %v953_v30 = vpop.eup %952 }
 0x1b6   : > { %v593_v31 = vsel %vm567_vm1, %v953_v30, 0.0 }
 0x1b7   : > { %594 = vadd.xlane.f32.xlu0 %v593_v31 }
 0x22a   : > { %v595_v34 = vpop.xlane.xlu0 %594 }
 0x22b   : > { %954 = vrcp.f32 %v595_v34 }
 0x231   : > { %v955_v35 = vpop.eup %954 }
 0x232   : > { %v597_v36 = vmul.f32 %v955_v35, %v953_v30 }
 0x234   : > { %v598_v37 = vpack.c.bf16 %v597_v36, %v597_v36 }
 0x236   : > { %861 = vmatmul.msk.bf16.vlgmr.msrb.gmra.mxu0 %vm567_vm1, %v598_v37 }
 0x2b3   : > { %v615_v38 = vpop.f32.mrf.mxu0 }
 0x2b4   : > { %v619_v39 = vpack.c.bf16 %v615_v38, %v615_v38 }
 0x2b6   : > { %862 = vmatmul.msk.bf16.vlgmr.msrb.gmra.mxu1 %vm567_vm1, %v619_v39 }
 0x2bb   : > { %v617_v40 = vpop.f32.mrf.mxu0 }
 0x333   : > { %v636_v41 = vpop.f32.mrf.mxu1 }
 0x337   : > { %643 = sbr.rel (%p863_p0) target bundleno = 830 (0x33e), region = 60 }
 0x33b   : > { %v638_v42 = vpop.f32.mrf.mxu1 }
 0x33c   : > { %v956_v43 = vld [vmem:[%s1287_s8] ss:$0 sm:$0xff] }
 0x33d   : > { %648 = vst.msk [vmem:[#allocation2] sm:$0xff] %vm481_vm0, %v956_v43 }
 0x33e PF: > { %p864_p1 = scmp.ne.s32.totalorder %s1035_s12, 3 }
 0x343   : > { %655 = sbr.rel (%p864_p1) target bundleno = 848 (0x350), region = 64 }
 0x344   : > { %v649_v44 = vld [vmem:[#allocation2] sm:$0xff] }
 0x345   : > { %v650_v45 = vadd.f32 %v649_v44, %v636_v41 }
 0x347   : > { %651 = vst.msk [vmem:[#allocation2] sm:$0xff] %vm481_vm0, %v650_v45 }
 0x34e   : > { %v656_v46 = vld [vmem:[#allocation2] sm:$0xff] }
 0x34f   : > { %657 = vst.msk [vmem:[%s426_s28] sm:$0xff] %vm481_vm0, %v656_v46 }
 0x350 PF: > { %s866_s27 = sshll.u32 %s1039_s13, 3  ;;  %s671_s4 = sshll.u32 %s426_s28, 4  ;;  %s672_s4 = int_to_ptr.vmem [resolvable:$true] %s671_s4 }
 0x351   : > { %s669_s19 = scalar_lea.hbm %s1288_s9, %s866_s27  ;;  %s1308_s11 = sand.u32 1, %s1027_s10  }
 0x352   : > { %s673_s30 = sshll.u32 %s669_s19, 4  ;;  %s659_s14 = scalar_lea.sflag [#allocation4], %s1308_s11  ;;  %s674_s30 = int_to_ptr.hbm [resolvable:$true] %s673_s30 }
 0x353   : > { %s971_s12 = sshra.s32 %s674_s30, 4  ;;  %s977_s13 = scalar_lea.hbm %s1288_s9, 16  ;;  %s972_s12 = int_to_ptr.hbm [resolvable:$true] %s971_s12 }
 0x354   : > { %s973_s15 = scalar_lea.hbm %s972_s12, 8  ;;  %p978_p6 = scmp.lt.s32.totalorder %s972_s12, %s1288_s9 }
 0x355   : > { %p974_p2 = scmp.ne.s32.totalorder %s972_s12, %s973_s15  ;;  %p979_p7 = scmp.lt.s32.totalorder %s977_s13, %s973_s15 }
 0x357   : > { %p975_p4 = pnand %p974_p2, %p1152_p3  ;;  %p980_p8 = por %p979_p7, %p978_p6 }
 0x359   : > { %p976_p5 = pneg %p975_p4 }
 0x35b   : > { %p981_p10 = pnand %p980_p8, %p976_p5 }
 0x35d   : > { %984 = shalt.err (!%p981_p10)
}
 0x35e   : > { %878 = dma.vmem_to_hbm [thread:$0]  (%p1152_p3), %s672_s4, 128, %s674_s30, %s659_s14  }
 0x35f PF: > { %s1309_s29 = sld [smem:[#allocation6_spill]]  ;;  %p884_p11 = scmp.ge.s32.totalorder %s1051_s16, 2 }
 0x361   : > { %p881_p12 = pnand %p884_p11, %p1162_p9 }
 0x363   : > { %p882_p13 = pneg %p881_p12 }
 0x365   : > { %s685_s17 = sand.u32 1, %s1309_s29  }
 0x366   : > { %s686_s24 = scalar_lea.sflag [#allocation4], %s685_s17 }
 0x367   : > { %1018 = dma.done.wait (%p882_p13), %s686_s24, 128  }
 0x368   : > { %1020 = vsyncadd (%p882_p13), %s686_s24, 4294967168  ;;  %s22_s16 = sadd.s32 1, %s1051_s16   ;;  %s1311_s27 = sld [smem:[#allocation7_spill]] }
 0x369   : > { %p19_p0 = scmp.ge.s32.totalorder %s22_s16, 10   ;;  %s1312_s11 = sld [smem:[#allocation13_spill]] }
 0x36a   : > { %s1313_s12 = sld [smem:[#allocation8_spill]]  ;;  %s1317_s30 = smov %s1027_s10 }
 0x36b   : > { %s1314_s13 = sld [smem:[#allocation9_spill]]  ;;  %21 = sbr.rel (!%p19_p0) target bundleno = 7 (0x7), region = 120 }
 0x36c   : > { %s1315_s14 = sld [smem:[#allocation10_spill]] }
 0x36d   : > { %s1316_s15 = sld [smem:[#allocation11_spill]] }
 0x36e   : > { %s1318_s10 = smov %s1311_s27 }
 0x370   :  { %692 = vsyncpa [#allocation4], 1 }
 0x371   :  { %694 = vsyncpa [#allocation4 + $0x1], 1 }

</bundles_post_ra>
